<compile_context>
chip_gen: v7x
topology: tpu7x:2x2x1
jax: 0.10.0
libtpu: 0.0.40
codegen_flags: <defaults>
</compile_context>

<pallas_src>
import math

import jax
import jax.numpy as jnp
from jax.experimental import pallas as pl
from jax.experimental.pallas import tpu as pltpu


def _round_up(a, b):
    return -(-a // b) * b


def _cdiv(a, b):
    return -(-a // b)


def _center_kernel(wsum_ref, b_ref, x_ref, o_ref):
    # wsum_ref: (1,) f32 in SMEM          -- sum(W), subtracted from every element
    # b_ref   : (L, F*3) f32              -- block-diagonal coefficients (grid-constant)
    # x_ref   : (TB, L)                   -- folded, lane-dense input tile
    # o_ref   : (TB, F*3)                 -- folded output tile
    x = x_ref[...].astype(jnp.float32)
    acc = jnp.dot(x, b_ref[...], preferred_element_type=jnp.float32)
    o_ref[...] = (acc - wsum_ref[0]).astype(o_ref.dtype)


def single_residue_get_center_v2(x, W, *, x_tile_bytes=6 * 1024 * 1024, f_cap=16):
    """x: (..., natom, 3), W: (1, natom)  ->  (..., 3)"""
    *batch, natom, three = x.shape
    assert three == 3
    assert W.shape == (1, natom)
    R = math.prod(batch) if batch else 1
    per_row = natom * 3

    # Coefficients (kept in f32; x tiles are cast to f32 inside the kernel so
    # bf16 inputs do not lose the coefficient precision — review concern).
    coeff = W.reshape(natom).astype(jnp.float32) + jnp.float32(1.0 / natom)   # (natom,)
    w_sum = jnp.sum(W.astype(jnp.float32)).reshape(1)                         # (1,) f32
    blk = (coeff[:, None, None] * jnp.eye(3, dtype=jnp.float32)).reshape(per_row, 3)

    # Fold factor: F rows -> one lane-dense row of L = F*per_row (L % 128 == 0).
    # Capped; fall back to F=1 (L = per_row = full last dim) rather than letting
    # B / the tile explode for odd per_row.
    F = 128 // math.gcd(per_row, 128)
    if F > f_cap:
        F = 1
    L = F * per_row

    x_flat = x.reshape(R, per_row)            # zero-copy (contiguous)
    Rmain = (R // F) * F                      # rows handled by the Pallas kernel
    tail = R - Rmain                          # < F rows handled in plain JAX

    pieces = []
    if Rmain > 0:
        Rf = Rmain // F
        xm = x_flat if tail == 0 else x_flat[:Rmain]   # prefix slice only when a tail exists
        xm = xm.reshape(Rf, L)                         # zero-copy fold

        B = blk if F == 1 else jnp.kron(jnp.eye(F, dtype=jnp.float32), blk)   # (L, F*3)

        # Row-tile from a per-buffer VMEM budget (lane-padded), multiple of 8.
        lane_L = _round_up(L, 128)
        TB = max(8, (x_tile_bytes // (lane_L * 4)) // 8 * 8)
        TB = min(TB, 8192)
        if Rf <= TB:
            TB = Rf                                    # single full block, no partial block
        else:
            # at least two grid steps so both v7x TensorCores get work
            TB = min(TB, max(8, _round_up(_cdiv(Rf, 2), 8)))
        grid = (_cdiv(Rf, TB),)                        # partial last block handled by Pallas

        out_main = pl.pallas_call(
            _center_kernel,
            out_shape=jax.ShapeDtypeStruct((Rf, F * 3), x.dtype),
            grid_spec=pltpu.PrefetchScalarGridSpec(
                num_scalar_prefetch=0,
                grid=grid,
                in_specs=[
                    pl.BlockSpec(memory_space=pltpu.MemorySpace.SMEM),   # w_sum scalar
                    pl.BlockSpec((L, F * 3), lambda i: (0, 0)),          # B (resident, constant map)
                    pl.BlockSpec((TB, L), lambda i: (i, 0)),             # x tile (lane-dense)
                ],
                out_specs=pl.BlockSpec((TB, F * 3), lambda i: (i, 0)),
            ),
            compiler_params=pltpu.CompilerParams(
                dimension_semantics=("parallel",),
                vmem_limit_bytes=32 * 1024 * 1024,   # actual use ~13-17 MiB; safe on v5e/v6e/v7x
            ),
        )(w_sum, B, xm)
        pieces.append(out_main.reshape(Rmain, 3))      # (Rf, F*3) -> (Rmain, 3): bitcast reshape

    if tail > 0:
        # < F leftover rows: plain JAX (negligible work; avoids any full-array pad/copy).
        xt = x_flat[Rmain:].astype(jnp.float32)                       # (tail, per_row)
        pieces.append((xt @ blk - w_sum[0]).astype(x.dtype))          # (tail, 3)

    out = pieces[0] if len(pieces) == 1 else jnp.concatenate(pieces, axis=0)
    return out.reshape(*batch, 3)


def _reference(x, W):
    # Exact (no-MXU) reference mirroring the PyTorch forward:
    #   x.mean(-2) + W @ x - W.sum()
    natom = x.shape[-2]
    coeff = W.reshape(-1).astype(jnp.float32) + jnp.float32(1.0 / natom)
    return (x.astype(jnp.float32) * coeff[:, None]).sum(-2) - jnp.sum(W.astype(jnp.float32))


if __name__ == "__main__":
    key = jax.random.PRNGKey(0)
    k_x, k_w, k_x2 = jax.random.split(key, 3)

    batch, seq, natom = 2, 8, 16
    x = jax.random.normal(k_x, (batch, seq, natom, 3), dtype=jnp.float32)
    # self_init() would zero W; use nonzero values so the linear path is exercised.
    W = jax.random.normal(k_w, (1, natom), dtype=jnp.float32) / natom

    out = jax.block_until_ready(single_residue_get_center_v2(x, W))
    ref = _reference(x, W)
    assert out.shape == (batch, seq, 3)
    assert jnp.allclose(out, ref, atol=1e-4, rtol=1e-4), (
        f"max err {jnp.max(jnp.abs(out - ref))}")

    # Exercise the tail path (row count not a multiple of the fold factor F=8).
    x2 = jax.random.normal(k_x2, (3, 5, natom, 3), dtype=jnp.float32)
    out2 = jax.block_until_ready(single_residue_get_center_v2(x2, W))
    ref2 = _reference(x2, W)
    assert out2.shape == (3, 5, 3)
    assert jnp.allclose(out2, ref2, atol=1e-4, rtol=1e-4), (
        f"max err {jnp.max(jnp.abs(out2 - ref2))}")

    print("KERNEL_OK")
</pallas_src>

<mosaic_0001>
module attributes {stable_mosaic.version = 11 : i64} {
  func.func @_center_kernel(%arg0: i32, %arg1: memref<1xf32, #tpu.memory_space<smem>>, %arg2: memref<384x24xf32, #tpu.memory_space<vmem>>, %arg3: memref<2x384xf32, #tpu.memory_space<vmem>>, %arg4: memref<2x24xf32, #tpu.memory_space<vmem>>) attributes {dimension_semantics = [#tpu.dimension_semantics<parallel>], iteration_bounds = array<i64: 1>, scalar_prefetch = 0 : i64, scratch_operands = 0 : i64, tpu.core_type = #tpu.core_type<tc>, window_params = [{transform_indices = @transform_0, window_bounds = array<i64: 1>}, {pipeline_mode = #tpu.pipeline_mode<synchronous>, transform_indices = @transform_1, window_bounds = array<i64: 384, 24>}, {transform_indices = @transform_2, window_bounds = array<i64: 2, 384>}, {transform_indices = @transform_3, window_bounds = array<i64: 2, 24>}]} {
    %c0 = arith.constant 0 : index
    %c0_0 = arith.constant 0 : index
    %0 = vector.load %arg3[%c0, %c0_0] : memref<2x384xf32, #tpu.memory_space<vmem>>, vector<2x384xf32>
    %c0_1 = arith.constant 0 : index
    %c0_2 = arith.constant 0 : index
    %1 = vector.load %arg2[%c0_1, %c0_2] : memref<384x24xf32, #tpu.memory_space<vmem>>, vector<384x24xf32>
    %cst = arith.constant dense<0.000000e+00> : vector<2x24xf32>
    %2 = tpu.matmul %0, %1, %cst {dimension_numbers = #tpu.dot_dimension_numbers<[1], [0], [0], [1], [0, 0, 1, 1], [], []>} : vector<2x384xf32>, vector<384x24xf32>, vector<2x24xf32> -> vector<2x24xf32>
    %c0_3 = arith.constant 0 : index
    %3 = memref.load %arg1[%c0_3] : memref<1xf32, #tpu.memory_space<smem>>
    %4 = vector.broadcast %3 : f32 to vector<2x24xf32>
    %5 = arith.subf %2, %4 : vector<2x24xf32>
    %c0_4 = arith.constant 0 : index
    %c0_5 = arith.constant 0 : index
    %6 = vector.load %arg4[%c0_4, %c0_5] : memref<2x24xf32, #tpu.memory_space<vmem>>, vector<2x24xf32>
    tpu.vector_store %arg4[%c0_4, %c0_5], %5 {strides = array<i32>} : memref<2x24xf32, #tpu.memory_space<vmem>>, vector<2x24xf32>,
    return
  }
  func.func @transform_0(%arg0: i32) -> i32 {
    %c0_i32 = arith.constant 0 : i32
    %c0_i32_0 = arith.constant 0 : i32
    return %c0_i32 : i32
  }
  func.func @transform_1(%arg0: i32) -> (i32, i32) {
    %c0_i32 = arith.constant 0 : i32
    %c0_i32_0 = arith.constant 0 : i32
    %c0_i32_1 = arith.constant 0 : i32
    return %c0_i32, %c0_i32_0 : i32, i32
  }
  func.func @transform_2(%arg0: i32) -> (i32, i32) {
    %c0_i32 = arith.constant 0 : i32
    %c0_i32_0 = arith.constant 0 : i32
    return %arg0, %c0_i32 : i32, i32
  }
  func.func @transform_3(%arg0: i32) -> (i32, i32) {
    %c0_i32 = arith.constant 0 : i32
    %c0_i32_0 = arith.constant 0 : i32
    return %arg0, %c0_i32 : i32, i32
  }
}

</mosaic_0001>

<bundles_post_ra>
// kernel: tpu_custom_call.1
= control target key start
LH: loop header
LB: loop body
LE: loop exit
PB: predicated region body
PF: predicated region fallthrough
CT: control target
= control target key end

     0   :  { %v417_v5 = vmov 0.0|0.0   ;;  %vm418_vm0 = vmmov 0   ;;  %v419_v13 = vmov 0.0   ;;  %v420_v23 = vmov 1983009808   ;;  %s612_s0 = inlined_call_operand.<no memory space> [shape: f32[1], index: 0, kind: input, shape index: {}]   ;;  %s613_s1 = inlined_call_operand.vmem [shape: f32[384,24], index: 1, kind: input, shape index: {}]   ;;  %s614_s2 = inlined_call_operand.vmem [shape: f32[2,384], index: 2, kind: input, shape index: {}]   ;;  %s615_s3 = inlined_call_operand.hbm [shape: f32[2,24], index: 3, kind: output, shape index: {}]  }
   0x1   :  { %v33_v0 = vld [vmem:[%s613_s1 + $0x80] sm:$0xff]  ;;  %v34_v1 = vld [vmem:[%s613_s1 + $0x88] sm:$0xff]  ;;  %363 = vmatprep.subr.bf16.mxu1 %v417_v5  ;;  %v35_v10 = vld [vmem:[%s613_s1 + $0x90] sm:$0xff]  ;;  %328 = vmatprep.mubr.msk.f32.mxu1 %vm418_vm0, %v419_v13  ;;  %v68_v24 = vunpack.c.l.s4 %v420_v23  ;;  %v70_v25 = vlaneseq }
   0x2   :  { %v17_v2 = vld [vmem:[%s613_s1] sm:$0xff]  ;;  %v331_v3 = vpack.c.bf16 %v34_v1, %v33_v0  ;;  %v18_v4 = vld [vmem:[%s613_s1 + $0x8] sm:$0xff]  ;;  %v36_v11 = vld [vmem:[%s613_s1 + $0x98] sm:$0xff] }
   0x3   :  { %v49_v6 = vld [vmem:[%s613_s1 + $0x100] sm:$0xff]  ;;  %v50_v7 = vld [vmem:[%s613_s1 + $0x108] sm:$0xff]  ;;  %v333_v8 = vpack.c.bf16 %v18_v4, %v17_v2  ;;  %v19_v12 = vld [vmem:[%s613_s1 + $0x10] sm:$0xff]  ;;  %v335_v14 = vpack.c.bf16 %v36_v11, %v35_v10  ;;  %v69_v35 = vunpack.c.0.s8 %v68_v24  ;;  %v71_v36 = vshrl.u32 %v70_v25, 7 }
   0x4   :  { %v364_v9 = vpack.c.bf16 %v50_v7, %v49_v6  ;;  %332 = vmatprep.subr.bf16.mxu0 %v331_v3  ;;  %v20_v15 = vld [vmem:[%s613_s1 + $0x18] sm:$0xff]  ;;  %v51_v16 = vld [vmem:[%s613_s1 + $0x110] sm:$0xff]  ;;  %v37_v20 = vld [vmem:[%s613_s1 + $0xa0] sm:$0xff] }
   0x5   :  { %v52_v17 = vld [vmem:[%s613_s1 + $0x118] sm:$0xff]  ;;  %334 = vmatpush3.bf16.msra.mxu0 %v333_v8  ;;  %v337_v18 = vpack.c.bf16 %v20_v15, %v19_v12  ;;  %v38_v21 = vld [vmem:[%s613_s1 + $0xa8] sm:$0xff]  ;;  %v21_v22 = vld [vmem:[%s613_s1 + $0x20] sm:$0xff]  ;;  %v72_v46 = vsub.s32 %v69_v35, %v71_v36 }
   0x6   :  { %365 = vmatpush3.bf16.msra.mxu1 %v364_v9  ;;  %v367_v19 = vpack.c.bf16 %v52_v17, %v51_v16  ;;  %336 = vmatprep.subr.bf16.mxu0 %v335_v14  ;;  %v339_v26 = vpack.c.bf16 %v38_v21, %v37_v20  ;;  %v22_v27 = vld [vmem:[%s613_s1 + $0x28] sm:$0xff]  ;;  %v53_v28 = vld [vmem:[%s613_s1 + $0x120] sm:$0xff]  ;;  %v39_v30 = vld [vmem:[%s613_s1 + $0xb0] sm:$0xff] }
   0x7   :  { %366 = vmatprep.subr.bf16.mxu1 %v417_v5  ;;  %v54_v29 = vld [vmem:[%s613_s1 + $0x128] sm:$0xff]  ;;  %v40_v31 = vld [vmem:[%s613_s1 + $0xb8] sm:$0xff]  ;;  %v341_v32 = vpack.c.bf16 %v22_v27, %v21_v22  ;;  %v23_v34 = vld [vmem:[%s613_s1 + $0x30] sm:$0xff] }
   0x8   :  { %v370_v33 = vpack.c.bf16 %v54_v29, %v53_v28  ;;  %v343_v37 = vpack.c.bf16 %v40_v31, %v39_v30  ;;  %v24_v38 = vld [vmem:[%s613_s1 + $0x38] sm:$0xff]  ;;  %v55_v39 = vld [vmem:[%s613_s1 + $0x130] sm:$0xff]  ;;  %v41_v41 = vld [vmem:[%s613_s1 + $0xc0] sm:$0xff] }
   0x9   :  { %338 = vmatpush3.bf16.msra.mxu0 %v337_v18  ;;  %v56_v40 = vld [vmem:[%s613_s1 + $0x138] sm:$0xff]  ;;  %v42_v42 = vld [vmem:[%s613_s1 + $0xc8] sm:$0xff]  ;;  %v345_v43 = vpack.c.bf16 %v24_v38, %v23_v34  ;;  %v25_v45 = vld [vmem:[%s613_s1 + $0x40] sm:$0xff] }
   0xa   :  { %368 = vmatpush3.bf16.msra.mxu1 %v367_v19  ;;  %340 = vmatprep.subr.bf16.mxu0 %v339_v26  ;;  %v373_v44 = vpack.c.bf16 %v56_v40, %v55_v39  ;;  %v347_v47 = vpack.c.bf16 %v42_v42, %v41_v41  ;;  %v26_v48 = vld [vmem:[%s613_s1 + $0x48] sm:$0xff]  ;;  %v57_v49 = vld [vmem:[%s613_s1 + $0x140] sm:$0xff]  ;;  %v43_v51 = vld [vmem:[%s613_s1 + $0xd0] sm:$0xff] }
   0xb   :  { %369 = vmatprep.subr.bf16.mxu1 %v417_v5  ;;  %v58_v50 = vld [vmem:[%s613_s1 + $0x148] sm:$0xff]  ;;  %v44_v52 = vld [vmem:[%s613_s1 + $0xd8] sm:$0xff]  ;;  %v16_v53 = vld [vmem:[%s614_s2] sm:$0x3f]  ;;  %v349_v54 = vpack.c.bf16 %v26_v48, %v25_v45 }
   0xc   :  { %v376_v55 = vpack.c.bf16 %v58_v50, %v57_v49  ;;  %v27_v56 = vld [vmem:[%s613_s1 + $0x50] sm:$0xff]  ;;  %v73_v57 = vrot.slane %v16_v53, %v72_v46 }
   0xd   :  { %342 = vmatpush3.bf16.msra.mxu0 %v341_v32 }
   0xe   :  { %371 = vmatpush3.bf16.msra.mxu1 %v370_v33  ;;  %344 = vmatprep.subr.bf16.mxu0 %v343_v37 }
   0xf   :  { %372 = vmatprep.subr.bf16.mxu1 %v417_v5 }
  0x11   :  { %346 = vmatpush3.bf16.msra.mxu0 %v345_v43 }
  0x12   :  { %374 = vmatpush3.bf16.msra.mxu1 %v373_v44 }
  0x13   :  { %9 = vsyncpa [#allocation4], 0  ;;  %348 = vmatprep.subr.bf16.mxu0 %v347_v47  ;;  %375 = vmatprep.subr.bf16.mxu1 %v417_v5  ;;  %v351_v58 = vpack.c.bf16 %v44_v52, %v43_v51  ;;  %v28_v59 = vld [vmem:[%s613_s1 + $0x58] sm:$0xff]  ;;  %v59_v60 = vld [vmem:[%s613_s1 + $0x150] sm:$0xff]  ;;  %v81_v0 = vcombine.high %v73_v57, %v73_v57  ;;  %v66_v18 = vcombine.high %v16_v53, %v16_v53  ;;  %v226_v27 = vstv %s612_s0  ;;  %s421_s2 = smov [#allocation3]  }
  0x14   :  { %v60_v61 = vld [vmem:[%s613_s1 + $0x158] sm:$0xff]  ;;  %v45_v62 = vld [vmem:[%s613_s1 + $0xe0] sm:$0xff]  ;;  %v46_v63 = vld [vmem:[%s613_s1 + $0xe8] sm:$0xff]  ;;  %v353_v1 = vpack.c.bf16 %v28_v59, %v27_v56  ;;  %s236_s29 = sshll.u32 %s421_s2, 4  ;;  %vm228_vm1 = vcmask 189440   ;;  %s237_s29 = int_to_ptr.vmem [resolvable:$true] %s236_s29 }
  0x15   :  { %350 = vmatpush3.bf16.msra.mxu0 %v349_v54  ;;  %v379_v2 = vpack.c.bf16 %v60_v61, %v59_v60  ;;  %v29_v3 = vld [vmem:[%s613_s1 + $0x60] sm:$0xff]  ;;  %v355_v4 = vpack.c.bf16 %v46_v63, %v45_v62  ;;  %v30_v6 = vld [vmem:[%s613_s1 + $0x68] sm:$0xff]  ;;  %v47_v9 = vld [vmem:[%s613_s1 + $0xf0] sm:$0xff]  ;;  %149 = vmatprep.mubr.f32.mxu0 %v81_v0  ;;  %v80_v21 = vrot.slane %v66_v18, %v72_v46  ;;  %s393_s30 = scalar_lea.vmem %s237_s29, 32  ;;  %p398_p1 = scmp.lt.s32.totalorder %s237_s29, %s237_s29 }
  0x16   :  { %377 = vmatpush3.bf16.msra.mxu1 %v376_v55  ;;  %352 = vmatprep.subr.bf16.mxu0 %v351_v58  ;;  %v61_v7 = vld [vmem:[%s613_s1 + $0x160] sm:$0xff]  ;;  %v62_v8 = vld [vmem:[%s613_s1 + $0x168] sm:$0xff]  ;;  %v48_v10 = vld [vmem:[%s613_s1 + $0xf8] sm:$0xff]  ;;  %v357_v11 = vpack.c.bf16 %v30_v6, %v29_v3  ;;  %p394_p0 = scmp.ne.s32.totalorder %s237_s29, %s393_s30  ;;  %p399_p2 = scmp.lt.s32.totalorder %s393_s30, %s393_s30 }
  0x17   :  { %378 = vmatprep.subr.bf16.mxu1 %v417_v5  ;;  %v382_v12 = vpack.c.bf16 %v62_v8, %v61_v7  ;;  %v31_v13 = vld [vmem:[%s613_s1 + $0x70] sm:$0xff]  ;;  %v359_v14 = vpack.c.bf16 %v48_v10, %v47_v9  ;;  %v32_v15 = vld [vmem:[%s613_s1 + $0x78] sm:$0xff] }
  0x18   :  { %v63_v16 = vld [vmem:[%s613_s1 + $0x170] sm:$0xff]  ;;  %v64_v17 = vld [vmem:[%s613_s1 + $0x178] sm:$0xff]  ;;  %v361_v19 = vpack.c.bf16 %v32_v15, %v31_v13  ;;  %p400_p3 = por %p399_p2, %p398_p1 }
  0x19   :  { %354 = vmatpush3.bf16.msra.mxu0 %v353_v1  ;;  %v385_v20 = vpack.c.bf16 %v64_v17, %v63_v16 }
  0x1a   :  { %380 = vmatpush3.bf16.msra.mxu1 %v379_v2  ;;  %356 = vmatprep.subr.bf16.mxu0 %v355_v4  ;;  %p401_p4 = pnand %p400_p3, %p394_p0 }
  0x1b   :  { %381 = vmatprep.subr.bf16.mxu1 %v417_v5 }
  0x1d   :  { %358 = vmatpush3.bf16.msra.mxu0 %v357_v11 }
  0x1e   :  { %383 = vmatpush3.bf16.msra.mxu1 %v382_v12  ;;  %360 = vmatprep.subr.bf16.mxu0 %v359_v14 }
  0x1f   :  { %384 = vmatprep.subr.bf16.mxu1 %v417_v5 }
  0x21   :  { %362 = vmatpush3.bf16.msra.mxu0 %v361_v19 }
  0x22   :  { %386 = vmatpush3.bf16.msra.mxu1 %v385_v20 }
  0x24   :  { %150 = vmatmul.mubr.f32.vlgmr.msra.gmra.mrb[0].mxu0 %v73_v57 }
  0x25   :  { %329 = vmatmul.mubr.f32.vlgmr.msra.gmra.mrb[0].mxu1 %v80_v21 }
  0xf7   :  { %v276_v22 = vpop.f32.mrb[0].mxu0 }
  0xf8   :  { %v221_v23 = vpop.f32.mrb[0].mxu1  ;;  %v277_v24 = vpop.f32.mrb[1].mxu0 }
  0xf9   :  { %v330_v25 = vpop.f32.mrb[1].mxu1  ;;  %v278_v26 = vadd.f32 %v277_v24, %v276_v22 }
  0xfb   :  { %v222_v28 = vadd.f32 %v278_v26, %v221_v23 }
  0xfd   :  { %v227_v29 = vsub.f32 %v222_v28, %v226_v27 }
  0xff   :  { %229 = vst.msk [vmem:[#allocation3] sm:$0x3] %vm228_vm1, %v227_v29 }
 0x100   :  { %404 = shalt.err (!%p401_p4)
}
 0x101   :  { %s405_s6 = scalar_lea.hbm %s615_s3, 32 }
 0x102   :  { %p406_p5 = scmp.ne.s32.totalorder %s615_s3, %s405_s6  ;;  %p409_p6 = scmp.lt.u32.totalorder %s405_s6, %s615_s3 }
 0x104   :  { %p411_p7 = pnand %p409_p6, %p406_p5 }
 0x106   :  { %414 = shalt.err (!%p411_p7)
}
 0x107   :  { %239 = dma.vmem_to_hbm [thread:$0]  %s237_s29, 32, %s615_s3, [#allocation4]  }
 0x108   :  { %415 = dma.done.wait [#allocation4], 32  }
 0x109   :  { %416 = vsyncadd [#allocation4], 4294967264 }
 0x10a   :  { %243 = vsyncpa [#allocation4], 1 }

</bundles_post_ra>
